<compile_context>
chip_gen: v7x
topology: tpu7x:2x2x1
jax: 0.10.0
libtpu: 0.0.40
codegen_flags: <defaults>
</compile_context>

<pallas_src>
import functools

import numpy as np
import jax
import jax.numpy as jnp
from jax.experimental import pallas as pl
from jax.experimental.pallas import tpu as pltpu


# ----------------------------- Pallas kernel ------------------------------- #

def _fused_ae_kernel(*refs, relu_flags):
    """Fully fused forward: h_{l+1} = relu?(h_l @ W_l + b_l), all in VMEM.

    refs = (x_ref, w_0, ..., w_{L-1}, b_packed, o_ref)
    """
    num_layers = len(relu_flags)
    x_ref = refs[0]
    w_refs = refs[1:1 + num_layers]
    b_ref = refs[1 + num_layers]
    o_ref = refs[2 + num_layers]

    h = x_ref[...]
    for i in range(num_layers):                    # unrolled at trace time
        w = w_refs[i][...]
        d_out = w.shape[1]
        b = b_ref[i:i + 1, 0:d_out]                # (1, d_out) static slice
        h = jnp.dot(h, w, preferred_element_type=jnp.float32) + b
        if relu_flags[i]:
            h = jnp.maximum(h, 0.0)
    o_ref[...] = h.astype(o_ref.dtype)


def fused_autoencoder_call(x_flat, w_mats, b_packed, relu_flags):
    n = x_flat.shape[0]
    num_layers = len(w_mats)
    d_out = w_mats[-1].shape[1]
    vmem = pl.BlockSpec(memory_space=pltpu.MemorySpace.VMEM)

    flops = 2 * n * sum(int(w.shape[0]) * int(w.shape[1]) for w in w_mats)
    bytes_accessed = 4 * (x_flat.size + sum(w.size for w in w_mats)
                          + b_packed.size + n * d_out)

    kernel = functools.partial(_fused_ae_kernel, relu_flags=tuple(relu_flags))
    return pl.pallas_call(
        kernel,
        out_shape=jax.ShapeDtypeStruct((n, d_out), jnp.float32),
        in_specs=[vmem] * (num_layers + 2),
        out_specs=vmem,
        cost_estimate=pl.CostEstimate(flops=flops, transcendentals=0,
                                      bytes_accessed=bytes_accessed),
    )(x_flat, *w_mats, b_packed)


@functools.partial(jax.jit, static_argnames=('relu_flags',))
def autoencoder_forward(x, w_mats, b_packed, *, relu_flags):
    # forward(x) = decoder(encoder(x)): the two permutes in encode/decode cancel.
    n = x.shape[0]
    x_flat = x.reshape(n, -1)                      # (N, C*L), channel-major
    out = fused_autoencoder_call(x_flat, tuple(w_mats), b_packed, relu_flags)
    return out.reshape(n, 1, -1)                   # (N, 1, input_dim)


# ----------------- conv layers -> dense linear maps (prep) ----------------- #

def _conv1d_dense(w, b, l_in, stride, pad):
    """w: (C_out, C_in, K) -> dense (C_out*L_out, C_in*L_in), bias (C_out*L_out,)."""
    c_out, c_in, k = w.shape
    l_out = (l_in + 2 * pad - k) // stride + 1
    m4 = np.zeros((c_out, l_out, c_in, l_in), np.float32)
    for j in range(l_out):
        for t in range(k):
            i = j * stride + t - pad
            if 0 <= i < l_in:
                m4[:, j, :, i] += w[:, :, t]
    return m4.reshape(c_out * l_out, c_in * l_in), np.repeat(b, l_out), l_out


def _convtranspose1d_dense(w, b, l_in, stride, pad):
    """w: (C_in, C_out, K) (PyTorch ConvTranspose1d layout)."""
    c_in, c_out, k = w.shape
    l_out = (l_in - 1) * stride - 2 * pad + k
    m4 = np.zeros((c_out, l_out, c_in, l_in), np.float32)
    for i in range(l_in):
        for t in range(k):
            j = i * stride + t - pad
            if 0 <= j < l_out:
                m4[:, j, :, i] += w[:, :, t].T
    return m4.reshape(c_out * l_out, c_in * l_in), np.repeat(b, l_out), l_out


def layers_to_dense(cfgs, params, l_in):
    """Fold conv + bias + BatchNorm into per-layer (W', b') dense operands."""
    w_mats, biases, relu_flags = [], [], []
    l = l_in
    for cfg, p in zip(cfgs, params):
        w = np.asarray(p['w'], np.float32)
        b = np.asarray(p['b'], np.float32)
        a = np.asarray(p['bn_a'], np.float32)
        c = np.asarray(p['bn_c'], np.float32)
        if cfg['transposed']:
            m, bv, l = _convtranspose1d_dense(w, b, l, cfg['s'], cfg['p'])
        else:
            m, bv, l = _conv1d_dense(w, b, l, cfg['s'], cfg['p'])
        scale = np.repeat(a, l)                    # per-output-channel BN scale
        shift = np.repeat(c, l)
        m = m * scale[:, None]
        bv = scale * bv + shift
        w_mats.append(jnp.asarray(m.T))            # (D_in, D_out)
        biases.append(bv)
        relu_flags.append(bool(cfg['relu']))
    d_max = max(bv.shape[0] for bv in biases)
    b_packed = np.zeros((len(biases), d_max), np.float32)
    for i, bv in enumerate(biases):
        b_packed[i, :bv.shape[0]] = bv
    return tuple(w_mats), jnp.asarray(b_packed), tuple(relu_flags)


# --------------------------- model construction ---------------------------- #

def get_last_half(input_dim):
    # TODO(synk): get_last_half not provided in source; inferred as the number
    # of times input_dim divides by 2 plus the remaining odd factor.
    n, d = 0, input_dim
    while d % 2 == 0:
        d //= 2
        n += 1
    return n, d


def build_config(input_dim, z_dim, kernel, stride, padding):
    n, _ = get_last_half(input_dim)
    n = min(int(np.log(input_dim / 1.0) / np.log(2)), n)
    final_kernel = int(input_dim / 2 ** n)
    enc = [dict(cin=1, cout=z_dim, k=kernel, s=stride, p=padding,
                relu=True, transposed=False)]
    dec = [dict(cin=z_dim, cout=z_dim, k=final_kernel, s=1, p=0,
                relu=True, transposed=True)]
    for _ in range(n - 1):
        enc.append(dict(cin=z_dim, cout=z_dim, k=kernel, s=stride, p=padding,
                        relu=True, transposed=False))
        dec.append(dict(cin=z_dim, cout=z_dim, k=kernel, s=stride, p=padding,
                        relu=True, transposed=True))
    enc.append(dict(cin=z_dim, cout=z_dim, k=final_kernel, s=1, p=0,
                    relu=True, transposed=False))
    # x_Tconv: plain ConvTranspose1d(z_dim, 1); gaussian -> no sigmoid
    dec.append(dict(cin=z_dim, cout=1, k=kernel, s=stride, p=padding,
                    relu=False, transposed=True))
    return enc, dec


def init_params(key, layers):
    params = []
    eps = 1e-5
    for cfg in layers:
        key, kw, kb, kg, kbt = jax.random.split(key, 5)
        cin, cout, k = cfg['cin'], cfg['cout'], cfg['k']
        w_shape = (cin, cout, k) if cfg['transposed'] else (cout, cin, k)
        w = 0.1 * jax.random.normal(kw, w_shape, jnp.float32)
        b = 0.1 * jax.random.normal(kb, (cout,), jnp.float32)
        if cfg['relu']:   # ConvBlock / TransposedConvBlock: BatchNorm present
            gamma = 1.0 + 0.05 * jax.random.normal(kg, (cout,), jnp.float32)
            beta = 0.05 * jax.random.normal(kbt, (cout,), jnp.float32)
            mean = jnp.zeros((cout,), jnp.float32)
            var = jnp.ones((cout,), jnp.float32)
            a = gamma / jnp.sqrt(var + eps)
            c = beta - mean * a
        else:             # final plain ConvTranspose1d: identity scale/shift
            a = jnp.ones((cout,), jnp.float32)
            c = jnp.zeros((cout,), jnp.float32)
        params.append(dict(w=w, b=b, bn_a=a, bn_c=c))
    return params


# ----------------------- pure-JAX reference (check) ------------------------ #

def ref_forward(x, cfgs, params):
    dn = ('NCH', 'OIH', 'NCH')
    h = x
    for cfg, p in zip(cfgs, params):
        k, s, pad = cfg['k'], cfg['s'], cfg['p']
        if cfg['transposed']:
            w = jnp.flip(jnp.transpose(p['w'], (1, 0, 2)), axis=2)
            y = jax.lax.conv_general_dilated(
                h, w, window_strides=(1,), padding=[(k - 1 - pad, k - 1 - pad)],
                lhs_dilation=(s,), dimension_numbers=dn)
        else:
            y = jax.lax.conv_general_dilated(
                h, p['w'], window_strides=(s,), padding=[(pad, pad)],
                dimension_numbers=dn)
        y = y + p['b'][None, :, None]
        y = p['bn_a'][None, :, None] * y + p['bn_c'][None, :, None]
        if cfg['relu']:
            y = jnp.maximum(y, 0.0)
        h = y
    return h


# --------------------------------- main ------------------------------------ #

if __name__ == "__main__":
    INPUT_DIM, Z_DIM, KERNEL, STRIDE, PAD = 48, 8, 4, 2, 1
    N = 2

    enc_cfg, dec_cfg = build_config(INPUT_DIM, Z_DIM, KERNEL, STRIDE, PAD)
    cfgs = enc_cfg + dec_cfg

    key = jax.random.PRNGKey(0)
    kx, ke, kd = jax.random.split(key, 3)
    params = init_params(ke, enc_cfg) + init_params(kd, dec_cfg)

    w_mats, b_packed, relu_flags = layers_to_dense(cfgs, params, INPUT_DIM)

    # input: (N, 1, input_dim) — PyTorch Conv1d NCL layout
    x = jax.random.normal(kx, (N, 1, INPUT_DIM), dtype=jnp.float32)

    x_hat = autoencoder_forward(x, w_mats, b_packed, relu_flags=relu_flags)
    x_hat = jax.block_until_ready(x_hat)

    assert x_hat.shape == (N, 1, INPUT_DIM), x_hat.shape
    assert bool(jnp.all(jnp.isfinite(x_hat)))

    # correctness vs a pure-JAX conv/convtranspose reference of the same module
    x_ref = ref_forward(x, cfgs, params)
    err = float(jnp.max(jnp.abs(x_hat - x_ref)))
    assert err < 1e-4, f"mismatch vs reference: {err}"

    print("KERNEL_OK")
</pallas_src>

<mosaic_0001>
module attributes {stable_mosaic.version = 11 : i64} {
  func.func @_fused_ae_kernel(%arg0: memref<2x48xf32, #tpu.memory_space<vmem>>, %arg1: memref<48x192xf32, #tpu.memory_space<vmem>>, %arg2: memref<192x96xf32, #tpu.memory_space<vmem>>, %arg3: memref<96x48xf32, #tpu.memory_space<vmem>>, %arg4: memref<48x24xf32, #tpu.memory_space<vmem>>, %arg5: memref<24x8xf32, #tpu.memory_space<vmem>>, %arg6: memref<8x24xf32, #tpu.memory_space<vmem>>, %arg7: memref<24x48xf32, #tpu.memory_space<vmem>>, %arg8: memref<48x96xf32, #tpu.memory_space<vmem>>, %arg9: memref<96x192xf32, #tpu.memory_space<vmem>>, %arg10: memref<192x48xf32, #tpu.memory_space<vmem>>, %arg11: memref<10x192xf32, #tpu.memory_space<vmem>>, %arg12: memref<2x48xf32, #tpu.memory_space<vmem>>) attributes {dimension_semantics = [], scalar_prefetch = 0 : i64, scratch_operands = 0 : i64, tpu.core_type = #tpu.core_type<tc>} {
    %c0 = arith.constant 0 : index
    %c0_0 = arith.constant 0 : index
    %0 = vector.load %arg0[%c0, %c0_0] : memref<2x48xf32, #tpu.memory_space<vmem>>, vector<2x48xf32>
    %c0_1 = arith.constant 0 : index
    %c0_2 = arith.constant 0 : index
    %1 = vector.load %arg1[%c0_1, %c0_2] : memref<48x192xf32, #tpu.memory_space<vmem>>, vector<48x192xf32>
    %c0_3 = arith.constant 0 : index
    %c0_4 = arith.constant 0 : index
    %2 = vector.load %arg11[%c0_3, %c0_4] : memref<10x192xf32, #tpu.memory_space<vmem>>, vector<1x192xf32>
    %cst = arith.constant dense<0.000000e+00> : vector<2x192xf32>
    %3 = tpu.matmul %0, %1, %cst {dimension_numbers = #tpu.dot_dimension_numbers<[1], [0], [0], [1], [0, 0, 1, 1], [], []>} : vector<2x48xf32>, vector<48x192xf32>, vector<2x192xf32> -> vector<2x192xf32>
    %4 = vector.broadcast %2 : vector<1x192xf32> to vector<2x192xf32>
    %5 = arith.addf %3, %4 : vector<2x192xf32>
    %cst_5 = arith.constant 0.000000e+00 : f32
    %6 = vector.broadcast %cst_5 : f32 to vector<2x192xf32>
    %7 = arith.maximumf %5, %6 : vector<2x192xf32>
    %c0_6 = arith.constant 0 : index
    %c0_7 = arith.constant 0 : index
    %8 = vector.load %arg2[%c0_6, %c0_7] : memref<192x96xf32, #tpu.memory_space<vmem>>, vector<192x96xf32>
    %c1 = arith.constant 1 : index
    %c0_8 = arith.constant 0 : index
    %9 = vector.load %arg11[%c1, %c0_8] : memref<10x192xf32, #tpu.memory_space<vmem>>, vector<1x96xf32>
    %cst_9 = arith.constant dense<0.000000e+00> : vector<2x96xf32>
    %10 = tpu.matmul %7, %8, %cst_9 {dimension_numbers = #tpu.dot_dimension_numbers<[1], [0], [0], [1], [0, 0, 1, 1], [], []>} : vector<2x192xf32>, vector<192x96xf32>, vector<2x96xf32> -> vector<2x96xf32>
    %11 = vector.broadcast %9 : vector<1x96xf32> to vector<2x96xf32>
    %12 = arith.addf %10, %11 : vector<2x96xf32>
    %cst_10 = arith.constant 0.000000e+00 : f32
    %13 = vector.broadcast %cst_10 : f32 to vector<2x96xf32>
    %14 = arith.maximumf %12, %13 : vector<2x96xf32>
    %c0_11 = arith.constant 0 : index
    %c0_12 = arith.constant 0 : index
    %15 = vector.load %arg3[%c0_11, %c0_12] : memref<96x48xf32, #tpu.memory_space<vmem>>, vector<96x48xf32>
    %c2 = arith.constant 2 : index
    %c0_13 = arith.constant 0 : index
    %16 = vector.load %arg11[%c2, %c0_13] : memref<10x192xf32, #tpu.memory_space<vmem>>, vector<1x48xf32>
    %cst_14 = arith.constant dense<0.000000e+00> : vector<2x48xf32>
    %17 = tpu.matmul %14, %15, %cst_14 {dimension_numbers = #tpu.dot_dimension_numbers<[1], [0], [0], [1], [0, 0, 1, 1], [], []>} : vector<2x96xf32>, vector<96x48xf32>, vector<2x48xf32> -> vector<2x48xf32>
    %18 = vector.broadcast %16 : vector<1x48xf32> to vector<2x48xf32>
    %19 = arith.addf %17, %18 : vector<2x48xf32>
    %cst_15 = arith.constant 0.000000e+00 : f32
    %20 = vector.broadcast %cst_15 : f32 to vector<2x48xf32>
    %21 = arith.maximumf %19, %20 : vector<2x48xf32>
    %c0_16 = arith.constant 0 : index
    %c0_17 = arith.constant 0 : index
    %22 = vector.load %arg4[%c0_16, %c0_17] : memref<48x24xf32, #tpu.memory_space<vmem>>, vector<48x24xf32>
    %c3 = arith.constant 3 : index
    %c0_18 = arith.constant 0 : index
    %23 = vector.load %arg11[%c3, %c0_18] : memref<10x192xf32, #tpu.memory_space<vmem>>, vector<1x24xf32>
    %cst_19 = arith.constant dense<0.000000e+00> : vector<2x24xf32>
    %24 = tpu.matmul %21, %22, %cst_19 {dimension_numbers = #tpu.dot_dimension_numbers<[1], [0], [0], [1], [0, 0, 1, 1], [], []>} : vector<2x48xf32>, vector<48x24xf32>, vector<2x24xf32> -> vector<2x24xf32>
    %25 = vector.broadcast %23 : vector<1x24xf32> to vector<2x24xf32>
    %26 = arith.addf %24, %25 : vector<2x24xf32>
    %cst_20 = arith.constant 0.000000e+00 : f32
    %27 = vector.broadcast %cst_20 : f32 to vector<2x24xf32>
    %28 = arith.maximumf %26, %27 : vector<2x24xf32>
    %c0_21 = arith.constant 0 : index
    %c0_22 = arith.constant 0 : index
    %29 = vector.load %arg5[%c0_21, %c0_22] : memref<24x8xf32, #tpu.memory_space<vmem>>, vector<24x8xf32>
    %c4 = arith.constant 4 : index
    %c0_23 = arith.constant 0 : index
    %30 = vector.load %arg11[%c4, %c0_23] : memref<10x192xf32, #tpu.memory_space<vmem>>, vector<1x8xf32>
    %cst_24 = arith.constant dense<0.000000e+00> : vector<2x8xf32>
    %31 = tpu.matmul %28, %29, %cst_24 {dimension_numbers = #tpu.dot_dimension_numbers<[1], [0], [0], [1], [0, 0, 1, 1], [], []>} : vector<2x24xf32>, vector<24x8xf32>, vector<2x8xf32> -> vector<2x8xf32>
    %32 = vector.broadcast %30 : vector<1x8xf32> to vector<2x8xf32>
    %33 = arith.addf %31, %32 : vector<2x8xf32>
    %cst_25 = arith.constant 0.000000e+00 : f32
    %34 = vector.broadcast %cst_25 : f32 to vector<2x8xf32>
    %35 = arith.maximumf %33, %34 : vector<2x8xf32>
    %c0_26 = arith.constant 0 : index
    %c0_27 = arith.constant 0 : index
    %36 = vector.load %arg6[%c0_26, %c0_27] : memref<8x24xf32, #tpu.memory_space<vmem>>, vector<8x24xf32>
    %c5 = arith.constant 5 : index
    %c0_28 = arith.constant 0 : index
    %37 = vector.load %arg11[%c5, %c0_28] : memref<10x192xf32, #tpu.memory_space<vmem>>, vector<1x24xf32>
    %cst_29 = arith.constant dense<0.000000e+00> : vector<2x24xf32>
    %38 = tpu.matmul %35, %36, %cst_29 {dimension_numbers = #tpu.dot_dimension_numbers<[1], [0], [0], [1], [0, 0, 1, 1], [], []>} : vector<2x8xf32>, vector<8x24xf32>, vector<2x24xf32> -> vector<2x24xf32>
    %39 = vector.broadcast %37 : vector<1x24xf32> to vector<2x24xf32>
    %40 = arith.addf %38, %39 : vector<2x24xf32>
    %cst_30 = arith.constant 0.000000e+00 : f32
    %41 = vector.broadcast %cst_30 : f32 to vector<2x24xf32>
    %42 = arith.maximumf %40, %41 : vector<2x24xf32>
    %c0_31 = arith.constant 0 : index
    %c0_32 = arith.constant 0 : index
    %43 = vector.load %arg7[%c0_31, %c0_32] : memref<24x48xf32, #tpu.memory_space<vmem>>, vector<24x48xf32>
    %c6 = arith.constant 6 : index
    %c0_33 = arith.constant 0 : index
    %44 = vector.load %arg11[%c6, %c0_33] : memref<10x192xf32, #tpu.memory_space<vmem>>, vector<1x48xf32>
    %cst_34 = arith.constant dense<0.000000e+00> : vector<2x48xf32>
    %45 = tpu.matmul %42, %43, %cst_34 {dimension_numbers = #tpu.dot_dimension_numbers<[1], [0], [0], [1], [0, 0, 1, 1], [], []>} : vector<2x24xf32>, vector<24x48xf32>, vector<2x48xf32> -> vector<2x48xf32>
    %46 = vector.broadcast %44 : vector<1x48xf32> to vector<2x48xf32>
    %47 = arith.addf %45, %46 : vector<2x48xf32>
    %cst_35 = arith.constant 0.000000e+00 : f32
    %48 = vector.broadcast %cst_35 : f32 to vector<2x48xf32>
    %49 = arith.maximumf %47, %48 : vector<2x48xf32>
    %c0_36 = arith.constant 0 : index
    %c0_37 = arith.constant 0 : index
    %50 = vector.load %arg8[%c0_36, %c0_37] : memref<48x96xf32, #tpu.memory_space<vmem>>, vector<48x96xf32>
    %c7 = arith.constant 7 : index
    %c0_38 = arith.constant 0 : index
    %51 = vector.load %arg11[%c7, %c0_38] : memref<10x192xf32, #tpu.memory_space<vmem>>, vector<1x96xf32>
    %cst_39 = arith.constant dense<0.000000e+00> : vector<2x96xf32>
    %52 = tpu.matmul %49, %50, %cst_39 {dimension_numbers = #tpu.dot_dimension_numbers<[1], [0], [0], [1], [0, 0, 1, 1], [], []>} : vector<2x48xf32>, vector<48x96xf32>, vector<2x96xf32> -> vector<2x96xf32>
    %53 = vector.broadcast %51 : vector<1x96xf32> to vector<2x96xf32>
    %54 = arith.addf %52, %53 : vector<2x96xf32>
    %cst_40 = arith.constant 0.000000e+00 : f32
    %55 = vector.broadcast %cst_40 : f32 to vector<2x96xf32>
    %56 = arith.maximumf %54, %55 : vector<2x96xf32>
    %c0_41 = arith.constant 0 : index
    %c0_42 = arith.constant 0 : index
    %57 = vector.load %arg9[%c0_41, %c0_42] : memref<96x192xf32, #tpu.memory_space<vmem>>, vector<96x192xf32>
    %c8 = arith.constant 8 : index
    %c0_43 = arith.constant 0 : index
    %58 = vector.load %arg11[%c8, %c0_43] : memref<10x192xf32, #tpu.memory_space<vmem>>, vector<1x192xf32>
    %cst_44 = arith.constant dense<0.000000e+00> : vector<2x192xf32>
    %59 = tpu.matmul %56, %57, %cst_44 {dimension_numbers = #tpu.dot_dimension_numbers<[1], [0], [0], [1], [0, 0, 1, 1], [], []>} : vector<2x96xf32>, vector<96x192xf32>, vector<2x192xf32> -> vector<2x192xf32>
    %60 = vector.broadcast %58 : vector<1x192xf32> to vector<2x192xf32>
    %61 = arith.addf %59, %60 : vector<2x192xf32>
    %cst_45 = arith.constant 0.000000e+00 : f32
    %62 = vector.broadcast %cst_45 : f32 to vector<2x192xf32>
    %63 = arith.maximumf %61, %62 : vector<2x192xf32>
    %c0_46 = arith.constant 0 : index
    %c0_47 = arith.constant 0 : index
    %64 = vector.load %arg10[%c0_46, %c0_47] : memref<192x48xf32, #tpu.memory_space<vmem>>, vector<192x48xf32>
    %c9 = arith.constant 9 : index
    %c0_48 = arith.constant 0 : index
    %65 = vector.load %arg11[%c9, %c0_48] : memref<10x192xf32, #tpu.memory_space<vmem>>, vector<1x48xf32>
    %cst_49 = arith.constant dense<0.000000e+00> : vector<2x48xf32>
    %66 = tpu.matmul %63, %64, %cst_49 {dimension_numbers = #tpu.dot_dimension_numbers<[1], [0], [0], [1], [0, 0, 1, 1], [], []>} : vector<2x192xf32>, vector<192x48xf32>, vector<2x48xf32> -> vector<2x48xf32>
    %67 = vector.broadcast %65 : vector<1x48xf32> to vector<2x48xf32>
    %68 = arith.addf %66, %67 : vector<2x48xf32>
    %c0_50 = arith.constant 0 : index
    %c0_51 = arith.constant 0 : index
    %69 = vector.load %arg12[%c0_50, %c0_51] : memref<2x48xf32, #tpu.memory_space<vmem>>, vector<2x48xf32>
    tpu.vector_store %arg12[%c0_50, %c0_51], %68 {strides = array<i32>} : memref<2x48xf32, #tpu.memory_space<vmem>>, vector<2x48xf32>,
    return
  }
}

</mosaic_0001>

<bundles_post_ra>
// kernel: autoencoder_forward.1
= control target key start
LH: loop header
LB: loop body
LE: loop exit
PB: predicated region body
PF: predicated region fallthrough
CT: control target
= control target key end

     0   :  { %17 = vsyncpa [#allocation3], 0  ;;  %s1951_s0 = inlined_call_operand.vmem [shape: f32[2,48], index: 0, kind: input, shape index: {}]   ;;  %s1952_s1 = inlined_call_operand.hbm [shape: f32[48,192], index: 1, kind: input, shape index: {}]   ;;  %s1953_s2 = inlined_call_operand.vmem [shape: f32[192,96], index: 2, kind: input, shape index: {}]   ;;  %s1954_s3 = inlined_call_operand.vmem [shape: f32[96,48], index: 3, kind: input, shape index: {}]   ;;  %s1955_s4 = inlined_call_operand.vmem [shape: f32[48,24], index: 4, kind: input, shape index: {}]   ;;  %s1956_s5 = inlined_call_operand.vmem [shape: f32[24,8], index: 5, kind: input, shape index: {}]   ;;  %s1957_s6 = inlined_call_operand.hbm [shape: f32[8,24], index: 6, kind: input, shape index: {}]   ;;  %s1958_s7 = inlined_call_operand.hbm [shape: f32[24,48], index: 7, kind: input, shape index: {}]   ;;  %s1959_s8 = inlined_call_operand.hbm [shape: f32[48,96], index: 8, kind: input, shape index: {}]   ;;  %s1960_s9 = inlined_call_operand.vmem [shape: f32[96,192], index: 9, kind: input, shape index: {}]   ;;  %s1961_s10 = inlined_call_operand.vmem [shape: f32[192,48], index: 10, kind: input, shape index: {}]   ;;  %s1962_s11 = inlined_call_operand.vmem [shape: f32[10,192], index: 11, kind: input, shape index: {}]   ;;  %s1963_s12 = inlined_call_operand.hbm [shape: f32[2,48], index: 12, kind: output, shape index: {}]  }
   0x1   :  { %18 = vsyncpa [#allocation6], 0 }
   0x2   :  { %19 = vsyncpa [#allocation9], 0 }
   0x3   :  { %20 = vsyncpa [#allocation4], 0  ;;  %s1419_s21 = smov [#allocation5]   ;;  %s1420_s23 = smov [#allocation2]  }
   0x4   :  { %s49_s22 = sshll.u32 %s1419_s21, 4  ;;  %s28_s24 = sshll.u32 %s1420_s23, 4  ;;  %s50_s22 = int_to_ptr.vmem [resolvable:$true] %s49_s22  ;;  %s1496_s24 = int_to_ptr.vmem [resolvable:$true] %s28_s24 }
   0x5   :  { %s1301_s27 = scalar_lea.hbm %s1957_s6, 128 }
   0x6   :  { %p1302_p0 = scmp.ne.s32.totalorder %s1957_s6, %s1301_s27  ;;  %p1305_p1 = scmp.lt.u32.totalorder %s1301_s27, %s1957_s6 }
   0x8   :  { %p1307_p2 = pnand %p1305_p1, %p1302_p0 }
   0xa   :  { %1310 = shalt.err (!%p1307_p2)
}
   0xb   :  { %s1311_s14 = scalar_lea.vmem %s50_s22, 128  ;;  %p1316_p4 = scmp.lt.s32.totalorder %s50_s22, %s50_s22 }
   0xc   :  { %p1312_p3 = scmp.ne.s32.totalorder %s50_s22, %s1311_s14  ;;  %p1317_p5 = scmp.lt.s32.totalorder %s1311_s14, %s1311_s14 }
   0xe   :  { %p1318_p6 = por %p1317_p5, %p1316_p4 }
  0x10   :  { %p1319_p7 = pnand %p1318_p6, %p1312_p3 }
  0x12   :  { %1322 = shalt.err (!%p1319_p7)
}
  0x13   :  { %52 = dma.hbm_to_vmem [thread:$0]  %s1957_s6, 128, %s50_s22, [#allocation6]  }
  0x14   :  { %s1323_s19 = scalar_lea.hbm %s1952_s1, 1536 }
  0x15   :  { %p1324_p8 = scmp.ne.s32.totalorder %s1952_s1, %s1323_s19  ;;  %p1327_p9 = scmp.lt.u32.totalorder %s1323_s19, %s1952_s1 }
  0x17   :  { %p1329_p10 = pnand %p1327_p9, %p1324_p8 }
  0x19   :  { %1332 = shalt.err (!%p1329_p10)
}
  0x1a   :  { %s1333_s26 = scalar_lea.vmem %s1496_s24, 1536  ;;  %p1338_p12 = scmp.lt.s32.totalorder %s1496_s24, %s1496_s24 }
  0x1b   :  { %p1334_p11 = scmp.ne.s32.totalorder %s1496_s24, %s1333_s26  ;;  %p1339_p13 = scmp.lt.s32.totalorder %s1333_s26, %s1333_s26 }
  0x1d   :  { %p1340_p0 = por %p1339_p13, %p1338_p12 }
  0x1f   :  { %p1341_p1 = pnand %p1340_p0, %p1334_p11 }
  0x21   :  { %1344 = shalt.err (!%p1341_p1)
}
  0x22   :  { %s1421_s6 = smov 256   ;;  %s1422_s22 = smov 16  }
  0x23   :  { %34 = dma.hbm_to_vmem [thread:$0]  %s1952_s1, 1536, %s1496_s24, [#allocation3], %s1421_s6, %s1421_s6, %s1422_s22  }
  0x24   :  { %s1423_s29 = smov [#allocation7]   ;;  %s1345_s15 = scalar_lea.hbm %s1958_s7, 384 }
  0x25   :  { %s58_s30 = sshll.u32 %s1423_s29, 4  ;;  %p1346_p2 = scmp.ne.s32.totalorder %s1958_s7, %s1345_s15  ;;  %s59_s30 = int_to_ptr.vmem [resolvable:$true] %s58_s30 }
  0x26   :  { %p1349_p3 = scmp.lt.u32.totalorder %s1345_s15, %s1958_s7 }
  0x28   :  { %p1351_p4 = pnand %p1349_p3, %p1346_p2 }
  0x2a   :  { %1354 = shalt.err (!%p1351_p4)
}
  0x2b   :  { %s1355_s20 = scalar_lea.vmem %s59_s30, 384  ;;  %p1360_p6 = scmp.lt.s32.totalorder %s59_s30, %s59_s30 }
  0x2c   :  { %p1356_p5 = scmp.ne.s32.totalorder %s59_s30, %s1355_s20  ;;  %p1361_p7 = scmp.lt.s32.totalorder %s1355_s20, %s1355_s20 }
  0x2e   :  { %p1362_p8 = por %p1361_p7, %p1360_p6 }
  0x30   :  { %p1363_p9 = pnand %p1362_p8, %p1356_p5 }
  0x32   :  { %1366 = shalt.err (!%p1363_p9)
}
  0x33   :  { %s1424_s1 = smov 128   ;;  %s1425_s24 = smov 8  }
  0x34   :  { %64 = dma.hbm_to_vmem [thread:$0]  %s1958_s7, 384, %s59_s30, [#allocation6], %s1424_s1, %s1424_s1, %s1425_s24  }
  0x35   :  { %s1426_s25 = smov [#allocation8]   ;;  %s1367_s27 = scalar_lea.hbm %s1959_s8, 768 }
  0x36   :  { %s70_s26 = sshll.u32 %s1426_s25, 4  ;;  %p1368_p10 = scmp.ne.s32.totalorder %s1959_s8, %s1367_s27  ;;  %s71_s26 = int_to_ptr.vmem [resolvable:$true] %s70_s26 }
  0x37   :  { %p1371_p11 = scmp.lt.u32.totalorder %s1367_s27, %s1959_s8 }
  0x39   :  { %p1373_p12 = pnand %p1371_p11, %p1368_p10 }
  0x3b   :  { %1376 = shalt.err (!%p1373_p12)
}
  0x3c   :  { %s1377_s15 = scalar_lea.vmem %s71_s26, 768  ;;  %p1382_p0 = scmp.lt.s32.totalorder %s71_s26, %s71_s26 }
  0x3d   :  { %p1378_p13 = scmp.ne.s32.totalorder %s71_s26, %s1377_s15  ;;  %p1383_p1 = scmp.lt.s32.totalorder %s1377_s15, %s1377_s15 }
  0x3f   :  { %p1384_p2 = por %p1383_p1, %p1382_p0 }
  0x41   :  { %p1385_p3 = pnand %p1384_p2, %p1378_p13 }
  0x43   :  { %1388 = shalt.err (!%p1385_p3)
}
  0x44   :  { %76 = dma.hbm_to_vmem [thread:$0]  %s1959_s8, 768, %s71_s26, [#allocation9], %s1424_s1, %s1424_s1, %s1425_s24  }
  0x45   :  { %1411 = dma.done.wait [#allocation3], 1536  }
  0x46   :  { %1412 = vsyncadd [#allocation3], 4294965760 }
  0x47   :  { %1413 = dma.done.wait [#allocation6], 512  }
  0x48   :  { %1414 = vsyncadd [#allocation6], 4294966784 }
  0x49   :  { %1415 = dma.done.wait [#allocation9], 768  }
  0x4a   :  { %1416 = vsyncadd [#allocation9], 4294966528  ;;  %v1427_v0 = vmov 0.0   ;;  %v1428_v1 = vmov 0.0|0.0   ;;  %v97_v2 = vld [vmem:[#allocation2 + $0x8] sm:$0xff]  ;;  %v99_v3 = vld [vmem:[#allocation2 + $0x18] sm:$0xff] }
  0x4b   :  { %188 = vmatprep.mubr.f32.mxu1 %v1427_v0  ;;  %1187 = vmatprep.subr.bf16.mxu0 %v1428_v1  ;;  %v96_v4 = vld [vmem:[#allocation2] sm:$0xff]  ;;  %v1139_v5 = vpack.c.bf16 %v99_v3, %v97_v2  ;;  %v98_v6 = vld [vmem:[#allocation2 + $0x10] sm:$0xff]  ;;  %v101_v7 = vld [vmem:[#allocation2 + $0x28] sm:$0xff]  ;;  %vm120_vm0 = vcmask 392192   ;;  %vm222_vm1 = vcmask 523264   ;;  %vm1429_vm2 = vmmov 0  }
  0x4c   :  { %v103_v8 = vld [vmem:[#allocation2 + $0x38] sm:$0xff]  ;;  %v1141_v9 = vpack.c.bf16 %v98_v6, %v96_v4  ;;  %v100_v11 = vld [vmem:[#allocation2 + $0x20] sm:$0xff]  ;;  %v102_v12 = vld [vmem:[#allocation2 + $0x30] sm:$0xff]  ;;  %1083 = vmatprep.mubr.msk.f32.mxu0 %vm1429_vm2, %v1427_v0  ;;  %vm310_vm3 = vcmask 785408   ;;  %vm470_vm4 = vcmask 195584   ;;  %vm547_vm5 = vcmask 64512  }
  0x4d   :  { %v1143_v10 = vpack.c.bf16 %v103_v8, %v101_v7  ;;  %v105_v13 = vld [vmem:[#allocation2 + $0x48] sm:$0xff]  ;;  %1140 = vmatprep.subr.bf16.mxu1 %v1139_v5  ;;  %v107_v14 = vld [vmem:[#allocation2 + $0x58] sm:$0xff]  ;;  %v1145_v15 = vpack.c.bf16 %v102_v12, %v100_v11  ;;  %v104_v17 = vld [vmem:[#allocation2 + $0x40] sm:$0xff]  ;;  %s1430_s16 = smov [#allocation10]   ;;  %vm992_vm6 = vcmask 386048  }
  0x4e   :  { %1142 = vmatpush1.bf16.msra.mxu1 %v1141_v9  ;;  %v1147_v16 = vpack.c.bf16 %v107_v14, %v105_v13  ;;  %v106_v18 = vld [vmem:[#allocation2 + $0x50] sm:$0xff]  ;;  %v197_v20 = vld [vmem:[%s1953_s2] sm:$0xff]  ;;  %v198_v21 = vld [vmem:[%s1953_s2 + $0x8] sm:$0xff]  ;;  %s1000_s17 = sshll.u32 %s1430_s16, 4  ;;  %s1001_s17 = int_to_ptr.vmem [resolvable:$true] %s1000_s17 }
  0x4f   :  { %1144 = vmatprep.subr.bf16.mxu1 %v1143_v10  ;;  %v1149_v19 = vpack.c.bf16 %v106_v18, %v104_v17  ;;  %v95_v22 = vld [vmem:[%s1951_s0] sm:$0x3]  ;;  %v1152_v23 = vpack.c.bf16 %v198_v21, %v197_v20  ;;  %v199_v24 = vld [vmem:[%s1953_s2 + $0x10] sm:$0xff]  ;;  %v200_v25 = vld [vmem:[%s1953_s2 + $0x18] sm:$0xff]  ;;  %v110_v10 = vlaneseq  ;;  %s1389_s18 = scalar_lea.vmem %s1001_s17, 32  ;;  %p1394_p5 = scmp.lt.s32.totalorder %s1001_s17, %s1001_s17 }
  0x50   :  { %v1155_v26 = vpack.c.bf16 %v200_v25, %v199_v24  ;;  %v201_v27 = vld [vmem:[%s1953_s2 + $0x20] sm:$0xff]  ;;  %v202_v28 = vld [vmem:[%s1953_s2 + $0x28] sm:$0xff]  ;;  %v203_v30 = vld [vmem:[%s1953_s2 + $0x30] sm:$0xff]  ;;  %p1390_p4 = scmp.ne.s32.totalorder %s1001_s17, %s1389_s18  ;;  %p1395_p6 = scmp.lt.s32.totalorder %s1389_s18, %s1389_s18 }
  0x51   :  { %v1158_v29 = vpack.c.bf16 %v202_v28, %v201_v27  ;;  %v204_v31 = vld [vmem:[%s1953_s2 + $0x38] sm:$0xff]  ;;  %v205_v33 = vld [vmem:[%s1953_s2 + $0x40] sm:$0xff]  ;;  %v206_v34 = vld [vmem:[%s1953_s2 + $0x48] sm:$0xff]  ;;  %v1677_v11 = vshrl.u32 %v110_v10, 7 }
  0x52   :  { %1146 = vmatpush1.bf16.msra.mxu1 %v1145_v15  ;;  %v1161_v32 = vpack.c.bf16 %v204_v31, %v203_v30  ;;  %v1164_v35 = vpack.c.bf16 %v206_v34, %v205_v33  ;;  %v207_v36 = vld [vmem:[%s1953_s2 + $0x50] sm:$0xff]  ;;  %v208_v37 = vld [vmem:[%s1953_s2 + $0x58] sm:$0xff]  ;;  %v209_v39 = vld [vmem:[%s1953_s2 + $0x60] sm:$0xff]  ;;  %p1396_p7 = por %p1395_p6, %p1394_p5 }
  0x53   :  { %1148 = vmatprep.subr.bf16.mxu1 %v1147_v16  ;;  %v1167_v38 = vpack.c.bf16 %v208_v37, %v207_v36  ;;  %v210_v40 = vld [vmem:[%s1953_s2 + $0x68] sm:$0xff]  ;;  %v211_v42 = vld [vmem:[%s1953_s2 + $0x70] sm:$0xff]  ;;  %v212_v43 = vld [vmem:[%s1953_s2 + $0x78] sm:$0xff]  ;;  %v112_v12 = vsub.s32 0, %v1677_v11  ;;  %v116_v14 = vsub.s32 1, %v1677_v11 }
  0x54   :  { %v1170_v41 = vpack.c.bf16 %v210_v40, %v209_v39  ;;  %v1173_v44 = vpack.c.bf16 %v212_v43, %v211_v42  ;;  %v213_v45 = vld [vmem:[%s1953_s2 + $0x80] sm:$0xff]  ;;  %v214_v46 = vld [vmem:[%s1953_s2 + $0x88] sm:$0xff]  ;;  %v215_v48 = vld [vmem:[%s1953_s2 + $0x90] sm:$0xff]  ;;  %p1397_p8 = pnand %p1396_p7, %p1390_p4 }
  0x55   :  { %v1176_v47 = vpack.c.bf16 %v214_v46, %v213_v45  ;;  %v216_v49 = vld [vmem:[%s1953_s2 + $0x98] sm:$0xff]  ;;  %v217_v51 = vld [vmem:[%s1953_s2 + $0xa0] sm:$0xff]  ;;  %v218_v52 = vld [vmem:[%s1953_s2 + $0xa8] sm:$0xff] }
  0x56   :  { %1150 = vmatpush1.bf16.msra.mxu1 %v1149_v19  ;;  %v1179_v50 = vpack.c.bf16 %v216_v49, %v215_v48  ;;  %v1182_v53 = vpack.c.bf16 %v218_v52, %v217_v51  ;;  %v219_v54 = vld [vmem:[%s1953_s2 + $0xb0] sm:$0xff]  ;;  %v220_v55 = vld [vmem:[%s1953_s2 + $0xb8] sm:$0xff]  ;;  %v297_v57 = vld [vmem:[%s1954_s3] sm:$0xff] }
  0x57   :  { %1151 = vmatprep.subr.bf16.mxu1 %v1428_v1  ;;  %v1185_v56 = vpack.c.bf16 %v220_v55, %v219_v54  ;;  %v298_v58 = vld [vmem:[%s1954_s3 + $0x8] sm:$0xff]  ;;  %v299_v59 = vld [vmem:[%s1954_s3 + $0x10] sm:$0xff]  ;;  %v300_v61 = vld [vmem:[%s1954_s3 + $0x18] sm:$0xff] }
  0x58   :  { %v1188_v60 = vpack.c.bf16 %v298_v58, %v297_v57  ;;  %v1191_v62 = vpack.c.bf16 %v300_v61, %v299_v59  ;;  %v301_v63 = vld [vmem:[%s1954_s3 + $0x20] sm:$0xff]  ;;  %v302_v2 = vld [vmem:[%s1954_s3 + $0x28] sm:$0xff]  ;;  %v303_v4 = vld [vmem:[%s1954_s3 + $0x30] sm:$0xff] }
  0x59   :  { %1011 = vmatmul.mubr.msk.f32.vlgmr.msra.gmra.mrb[0].mxu1 %vm120_vm0, %v95_v22  ;;  %v1194_v3 = vpack.c.bf16 %v302_v2, %v301_v63  ;;  %v304_v5 = vld [vmem:[%s1954_s3 + $0x38] sm:$0xff]  ;;  %v305_v7 = vld [vmem:[%s1954_s3 + $0x40] sm:$0xff]  ;;  %v306_v8 = vld [vmem:[%s1954_s3 + $0x48] sm:$0xff] }
  0x5a   :  { %1153 = vmatpush1.bf16.msra.mxu1 %v1152_v23  ;;  %1189 = vmatpush3.bf16.msra.mxu0 %v1188_v60  ;;  %v1197_v6 = vpack.c.bf16 %v304_v5, %v303_v4  ;;  %v1200_v9 = vpack.c.bf16 %v306_v8, %v305_v7  ;;  %v108_v13 = vld [vmem:[%s1962_s11] ss:$8 sm:$0x3]  ;;  %v307_v23 = vld [vmem:[%s1954_s3 + $0x50] sm:$0xff]  ;;  %v308_v24 = vld [vmem:[%s1954_s3 + $0x58] sm:$0xff] }
  0x5b   :  { %1154 = vmatprep.subr.bf16.mxu1 %v1428_v1  ;;  %1190 = vmatprep.subr.bf16.mxu0 %v1428_v1  ;;  %v113_v15 = vrot.slane %v108_v13, %v112_v12  ;;  %v117_v16 = vrot.slane %v108_v13, %v116_v14  ;;  %v1203_v25 = vpack.c.bf16 %v308_v24, %v307_v23  ;;  %v385_v27 = vld [vmem:[%s1955_s4] sm:$0xff]  ;;  %v386_v28 = vld [vmem:[%s1955_s4 + $0x8] sm:$0xff]  ;;  %v387_v34 = vld [vmem:[%s1955_s4 + $0x10] sm:$0xff] }
  0x5c   :  { %v389_v37 = vld [vmem:[%s1955_s4 + $0x20] sm:$0xff]  ;;  %v468_v48 = vld [vmem:[%s1956_s5 + $0x10] sm:$0xff]  ;;  %v624_v63 = vld [vmem:[#allocation7 + $0x10] sm:$0xff] }
  0x5d   :  { %v466_v40 = vld [vmem:[%s1956_s5] sm:$0xff]  ;;  %v623_v57 = vld [vmem:[#allocation7 + $0x8] sm:$0xff]  ;;  %v786_v23 = vld [vmem:[%s1960_s9 + $0x28] sm:$0xff] }
  0x5e   :  { %1156 = vmatpush1.bf16.msra.mxu1 %v1155_v26  ;;  %1192 = vmatpush3.bf16.msra.mxu0 %v1191_v62  ;;  %v221_v26 = vld [vmem:[%s1962_s11 + $0x1] ss:$0 sm:$0xff]  ;;  %v309_v43 = vld [vmem:[%s1962_s11 + $0x2] ss:$0 sm:$0xff]  ;;  %v391_v49 = vld [vmem:[%s1962_s11 + $0x3] ss:$0 sm:$0xff] }
  0x5f   :  { %1157 = vmatprep.subr.bf16.mxu1 %v1428_v1  ;;  %1193 = vmatprep.subr.bf16.mxu0 %v1428_v1  ;;  %v545_v54 = vld [vmem:[#allocation5] sm:$0xff]  ;;  %v702_v4 = vld [vmem:[#allocation8 + $0x10] sm:$0xff]  ;;  %v788_v24 = vld [vmem:[%s1960_s9 + $0x38] sm:$0xff] }
  0x60   :  { %v469_v55 = vld [vmem:[%s1962_s11 + $0x4] ss:$0 sm:$0xff]  ;;  %v546_v8 = vld [vmem:[%s1962_s11 + $0x5] ss:$0 sm:$0xff] }
  0x61   :  { %v700_v2 = vld [vmem:[#allocation8] sm:$0xff] }
  0x62   :  { %1159 = vmatpush1.bf16.msra.mxu1 %v1158_v29  ;;  %1195 = vmatpush3.bf16.msra.mxu0 %v1194_v3  ;;  %v701_v3 = vld [vmem:[#allocation8 + $0x8] sm:$0xff] }
  0x63   :  { %1160 = vmatprep.subr.bf16.mxu1 %v1428_v1  ;;  %1196 = vmatprep.subr.bf16.mxu0 %v1428_v1  ;;  %v1221_v5 = vpack.c.bf16 %v701_v3, %v700_v2  ;;  %v898_v3 = vld [vmem:[%s1961_s10 + $0x20] sm:$0xff] }
  0x66   :  { %1162 = vmatpush1.bf16.msra.mxu1 %v1161_v32  ;;  %1198 = vmatpush3.bf16.msra.mxu0 %v1197_v6  ;;  %v1206_v32 = vpack.c.bf16 %v386_v28, %v385_v27  ;;  %v703_v6 = vld [vmem:[#allocation8 + $0x18] sm:$0xff]  ;;  %v785_v27 = vld [vmem:[%s1960_s9 + $0x20] sm:$0xff]  ;;  %v787_v28 = vld [vmem:[%s1960_s9 + $0x30] sm:$0xff] }
  0x67   :  { %1163 = vmatprep.subr.bf16.mxu1 %v1428_v1  ;;  %1199 = vmatprep.subr.bf16.mxu0 %v1428_v1  ;;  %v1224_v7 = vpack.c.bf16 %v703_v6, %v702_v4  ;;  %v899_v4 = vld [vmem:[%s1961_s10 + $0x28] sm:$0xff]  ;;  %v900_v6 = vld [vmem:[%s1961_s10 + $0x30] sm:$0xff] }
  0x6a   :  { %1165 = vmatpush1.bf16.msra.mxu1 %v1164_v35  ;;  %1201 = vmatpush3.bf16.msra.mxu0 %v1200_v9  ;;  %v388_v35 = vld [vmem:[%s1955_s4 + $0x18] sm:$0xff] }
  0x6b   :  { %1166 = vmatprep.subr.bf16.mxu1 %v1428_v1  ;;  %1202 = vmatprep.subr.bf16.mxu0 %v1428_v1  ;;  %v1209_v36 = vpack.c.bf16 %v388_v35, %v387_v34  ;;  %v791_v34 = vld [vmem:[%s1960_s9 + $0x50] sm:$0xff]  ;;  %v794_v35 = vld [vmem:[%s1960_s9 + $0x68] sm:$0xff] }
  0x6e   :  { %1168 = vmatpush1.bf16.msra.mxu1 %v1167_v38  ;;  %1204 = vmatpush3.bf16.msra.mxu0 %v1203_v25  ;;  %v390_v38 = vld [vmem:[%s1955_s4 + $0x28] sm:$0xff] }
  0x6f   :  { %1169 = vmatprep.subr.bf16.mxu1 %v1428_v1  ;;  %1205 = vmatprep.subr.bf16.mxu0 %v1428_v1  ;;  %v1212_v39 = vpack.c.bf16 %v390_v38, %v389_v37 }
  0x72   :  { %1171 = vmatpush1.bf16.msra.mxu1 %v1170_v41  ;;  %v467_v41 = vld [vmem:[%s1956_s5 + $0x8] sm:$0xff] }
  0x73   :  { %1172 = vmatprep.subr.bf16.mxu1 %v1428_v1  ;;  %v1215_v42 = vpack.c.bf16 %v467_v41, %v466_v40  ;;  %v795_v40 = vld [vmem:[%s1960_s9 + $0x70] sm:$0xff]  ;;  %v798_v41 = vld [vmem:[%s1960_s9 + $0x88] sm:$0xff] }
  0x76   :  { %1174 = vmatpush1.bf16.msra.mxu1 %v1173_v44 }
  0x77   :  { %1175 = vmatprep.subr.bf16.mxu1 %v1428_v1 }
  0x7a   :  { %1177 = vmatpush1.bf16.msra.mxu1 %v1176_v47 }
  0x7b   :  { %1178 = vmatprep.subr.bf16.mxu1 %v1428_v1 }
  0x7e   :  { %1180 = vmatpush1.bf16.msra.mxu1 %v1179_v50 }
  0x7f   :  { %1181 = vmatprep.subr.bf16.mxu1 %v1428_v1 }
  0x82   :  { %1183 = vmatpush1.bf16.msra.mxu1 %v1182_v53 }
  0x83   :  { %1184 = vmatprep.subr.bf16.mxu1 %v1428_v1 }
  0x86   :  { %1186 = vmatpush1.bf16.msra.mxu1 %v1185_v56  ;;  %v622_v56 = vld [vmem:[#allocation7] sm:$0xff] }
  0x87   :  { %1214 = vmatprep.subr.bf16.mxu1 %v1428_v1  ;;  %v1218_v61 = vpack.c.bf16 %v623_v57, %v622_v56  ;;  %v801_v56 = vld [vmem:[%s1960_s9 + $0xa0] sm:$0xff]  ;;  %v803_v57 = vld [vmem:[%s1960_s9 + $0xb0] sm:$0xff] }
 0x12c   :  { %v190_v17 = vpop.f32.mrb[0].mxu1 }
 0x12d   :  { %v191_v18 = vadd.f32 %v190_v17, %v113_v15  ;;  %v192_v19 = vpop.f32.mrb[1].mxu1  ;;  %v705_v17 = vld [vmem:[#allocation8 + $0x28] sm:$0xff] }
 0x12e   :  { %v193_v20 = vadd.f32 %v192_v19, %v117_v16  ;;  %v704_v16 = vld [vmem:[#allocation8 + $0x20] sm:$0xff]  ;;  %v782_v19 = vld [vmem:[%s1960_s9 + $0x8] sm:$0xff] }
 0x12f   :  { %v195_v22 = vmax.f32 %v191_v18, 0.0  ;;  %v1227_v18 = vpack.c.bf16 %v705_v17, %v704_v16  ;;  %v905_v16 = vld [vmem:[%s1961_s10 + $0x58] sm:$0xff] }
 0x130   :  { %v196_v21 = vmax.f32 %v193_v20, 0.0  ;;  %v784_v20 = vld [vmem:[%s1960_s9 + $0x18] sm:$0xff] }
 0x132   :  { %1012 = vmatprep.mubr.msk.f32.mxu1 %vm222_vm1, %v196_v21  ;;  %v781_v21 = vld [vmem:[%s1960_s9] sm:$0xff] }
 0x133   :  { %291 = vmatmul.mubr.f32.vlgmr.msra.gmra.mrb[2].mxu1 %v195_v22  ;;  %v1229_v22 = vpack.c.bf16 %v784_v20, %v782_v19  ;;  %v907_v19 = vld [vmem:[%s1961_s10 + $0x68] sm:$0xff] }
 0x134   :  { %1107 = vmatprep.mubr.msk.f32.mxu1 %vm1429_vm2, %v1427_v0  ;;  %1216 = vmatpush3.bf16.msra.mxu1 %v1215_v42  ;;  %v800_v42 = vld [vmem:[%s1960_s9 + $0x98] sm:$0xff] }
 0x135   :  { %1105 = vmatprep.subr.mxu1 %v1427_v0 }
 0x138   :  { %1106 = vmatpush3.msra.mxu1 %v468_v48  ;;  %v625_v48 = vld [vmem:[%s1962_s11 + $0x6] ss:$0 sm:$0xff] }
 0x139   :  { %1110 = vmatprep.subr.mxu1 %v1427_v0 }
 0x206   :  { %v292_v29 = vpop.f32.mrb[2].mxu1 }
 0x207   :  { %v293_v30 = vadd.f32 %v292_v29, %v221_v26  ;;  %v294_v31 = vpop.f32.mrb[3].mxu1  ;;  %v1233_v26 = vpack.c.bf16 %v788_v24, %v786_v23  ;;  %v790_v29 = vld [vmem:[%s1960_s9 + $0x48] sm:$0xff]  ;;  %v910_v23 = vld [vmem:[%s1961_s10 + $0x80] sm:$0xff] }
 0x208   :  { %v1235_v31 = vpack.c.bf16 %v787_v28, %v785_v27  ;;  %v911_v24 = vld [vmem:[%s1961_s10 + $0x88] sm:$0xff]  ;;  %v913_v27 = vld [vmem:[%s1961_s10 + $0x98] sm:$0xff] }
 0x209   :  { %v296_v33 = vmax.f32 %v293_v30, 0.0  ;;  %v792_v30 = vld [vmem:[%s1960_s9 + $0x58] sm:$0xff] }
 0x20b   :  { %1084 = vmatmul.mubr.msk.f32.vlgmr.msra.gmra.mrb[0].mxu0 %vm310_vm3, %v296_v33  ;;  %v789_v33 = vld [vmem:[%s1960_s9 + $0x40] sm:$0xff] }
 0x20c   :  { %1207 = vmatpush3.bf16.msra.mxu0 %v1206_v32  ;;  %1098 = vmatprep.mubr.msk.f32.mxu0 %vm1429_vm2, %v1427_v0  ;;  %v1237_v32 = vpack.c.bf16 %v792_v30, %v790_v29  ;;  %v1239_v37 = vpack.c.bf16 %v791_v34, %v789_v33  ;;  %v706_v29 = vld [vmem:[%s1962_s11 + $0x7] ss:$0 sm:$0xff] }
 0x20d   :  { %1208 = vmatprep.subr.bf16.mxu0 %v1428_v1  ;;  %v914_v34 = vld [vmem:[%s1961_s10 + $0xa0] sm:$0xff] }
 0x210   :  { %1210 = vmatpush3.bf16.msra.mxu0 %v1209_v36  ;;  %v796_v36 = vld [vmem:[%s1960_s9 + $0x78] sm:$0xff] }
 0x211   :  { %1211 = vmatprep.subr.bf16.mxu0 %v1428_v1  ;;  %v1241_v38 = vpack.c.bf16 %v796_v36, %v794_v35  ;;  %v915_v35 = vld [vmem:[%s1961_s10 + $0xa8] sm:$0xff] }
 0x212   :  { %v1284_v36 = vpack.c.bf16 %v915_v35, %v914_v34 }
 0x214   :  { %1213 = vmatpush3.bf16.msra.mxu0 %v1212_v39  ;;  %v793_v39 = vld [vmem:[%s1960_s9 + $0x60] sm:$0xff] }
 0x215   :  { %1220 = vmatprep.subr.bf16.mxu0 %v1428_v1 }
 0x2de   :  { %v380_v44 = vpop.f32.mrb[0].mxu0 }
 0x2df   :  { %v381_v45 = vadd.f32 %v380_v44, %v309_v43  ;;  %v1085_v46 = vpop.f32.mrb[1].mxu0  ;;  %v1243_v43 = vpack.c.bf16 %v795_v40, %v793_v39  ;;  %v1245_v44 = vpack.c.bf16 %v800_v42, %v798_v41  ;;  %v1019_v40 = vld [vmem:[%s1962_s11 + $0x10] ss:$8 sm:$0x3] }
 0x2e0   :  { %v799_v46 = vld [vmem:[%s1960_s9 + $0x90] sm:$0xff]  ;;  %v811_v41 = vrot.slane %v1019_v40, %v112_v12 }
 0x2e1   :  { %v384_v47 = vmax.f32 %v381_v45, 0.0  ;;  %v797_v45 = vld [vmem:[%s1960_s9 + $0x80] sm:$0xff] }
 0x2e3   :  { %1099 = vmatmul.mubr.msk.f32.vlgmr.msra.gmra.mrb[2].mxu0 %vm120_vm0, %v384_v47  ;;  %v1247_v47 = vpack.c.bf16 %v799_v46, %v797_v45 }
 0x2e4   :  { %1136 = vmatprep.mubr.msk.f32.mxu0 %vm1429_vm2, %v1427_v0  ;;  %1222 = vmatpush3.bf16.msra.mxu0 %v1221_v5  ;;  %v1260_v5 = vpack.c.bf16 %v899_v4, %v898_v3 }
 0x2e5   :  { %1223 = vmatprep.subr.bf16.mxu0 %v1428_v1 }
 0x2e8   :  { %1225 = vmatpush3.bf16.msra.mxu0 %v1224_v7  ;;  %v901_v7 = vld [vmem:[%s1961_s10 + $0x38] sm:$0xff] }
 0x2e9   :  { %1226 = vmatprep.subr.bf16.mxu0 %v1428_v1 }
 0x2ec   :  { %1228 = vmatpush3.bf16.msra.mxu0 %v1227_v18  ;;  %v906_v18 = vld [vmem:[%s1961_s10 + $0x60] sm:$0xff] }
 0x2ed   :  { %1253 = vmatprep.subr.bf16.mxu0 %v1428_v1  ;;  %v1272_v20 = vpack.c.bf16 %v907_v19, %v906_v18 }
 0x3b6   :  { %v461_v50 = vpop.f32.mrb[2].mxu0 }
 0x3b7   :  { %v462_v51 = vadd.f32 %v461_v50, %v391_v49  ;;  %v1100_v52 = vpop.f32.mrb[3].mxu0 }
 0x3b9   :  { %v465_v53 = vmax.f32 %v462_v51, 0.0 }
 0x3bb   :  { %1108 = vmatmul.mubr.msk.f32.vlgmr.msra.gmra.mrb[4].mxu1 %vm470_vm4, %v465_v53  ;;  %v802_v53 = vld [vmem:[%s1960_s9 + $0xa8] sm:$0xff] }
 0x3bc   :  { %1112 = vmatprep.mubr.msk.f32.mxu1 %vm1429_vm2, %v1427_v0  ;;  %1111 = vmatpush3.msra.mxu1 %v545_v54  ;;  %v804_v54 = vld [vmem:[%s1960_s9 + $0xb8] sm:$0xff] }
 0x3bd   :  { %1217 = vmatprep.subr.bf16.mxu1 %v1428_v1 }
 0x48e   :  { %v540_v58 = vpop.f32.mrb[4].mxu1 }
 0x48f   :  { %v541_v59 = vadd.f32 %v540_v58, %v469_v55  ;;  %v1109_v60 = vpop.f32.mrb[5].mxu1  ;;  %v1249_v55 = vpack.c.bf16 %v804_v54, %v802_v53  ;;  %v1251_v58 = vpack.c.bf16 %v803_v57, %v801_v56 }
 0x490   :  { %v895_v60 = vld [vmem:[%s1961_s10 + $0x8] sm:$0xff] }
 0x491   :  { %v544_v62 = vmax.f32 %v541_v59, 0.0  ;;  %v894_v59 = vld [vmem:[%s1961_s10] sm:$0xff] }
 0x493   :  { %1113 = vmatmul.mubr.msk.f32.vlgmr.msra.gmra.mrb[6].mxu1 %vm547_vm5, %v544_v62  ;;  %v1254_v62 = vpack.c.bf16 %v895_v60, %v894_v59 }
 0x494   :  { %1219 = vmatpush3.bf16.msra.mxu1 %v1218_v61  ;;  %1121 = vmatprep.mubr.msk.f32.mxu1 %vm1429_vm2, %v1427_v0  ;;  %v896_v61 = vld [vmem:[%s1961_s10 + $0x10] sm:$0xff] }
 0x495   :  { %1119 = vmatprep.subr.mxu1 %v1427_v0 }
 0x498   :  { %1120 = vmatpush3.msra.mxu1 %v624_v63  ;;  %v897_v63 = vld [vmem:[%s1961_s10 + $0x18] sm:$0xff] }
 0x499   :  { %1230 = vmatprep.subr.bf16.mxu1 %v1229_v22  ;;  %v1257_v2 = vpack.c.bf16 %v897_v63, %v896_v61  ;;  %v909_v22 = vld [vmem:[%s1961_s10 + $0x78] sm:$0xff] }
 0x566   :  { %v617_v9 = vpop.f32.mrb[6].mxu1 }
 0x567   :  { %v618_v10 = vadd.f32 %v617_v9, %v546_v8  ;;  %v1114_v13 = vpop.f32.mrb[7].mxu1  ;;  %v1263_v8 = vpack.c.bf16 %v901_v7, %v900_v6  ;;  %v902_v9 = vld [vmem:[%s1961_s10 + $0x40] sm:$0xff] }
 0x569   :  { %v621_v15 = vmax.f32 %v618_v10, 0.0  ;;  %v903_v10 = vld [vmem:[%s1961_s10 + $0x48] sm:$0xff] }
 0x56a   :  { %v1266_v13 = vpack.c.bf16 %v903_v10, %v902_v9 }
 0x56b   :  { %1122 = vmatmul.mubr.msk.f32.vlgmr.msra.gmra.mrb[8].mxu1 %vm470_vm4, %v621_v15  ;;  %v904_v15 = vld [vmem:[%s1961_s10 + $0x50] sm:$0xff] }
 0x56c   :  { %885 = vmatprep.mubr.f32.mxu1 %v1427_v0  ;;  %v783_v0 = vld [vmem:[%s1960_s9 + $0x10] sm:$0xff]  ;;  %v1269_v17 = vpack.c.bf16 %v905_v16, %v904_v15 }
 0x56d   :  { %v1231_v25 = vpack.c.bf16 %v783_v0, %v781_v21  ;;  %v908_v21 = vld [vmem:[%s1961_s10 + $0x70] sm:$0xff] }
 0x56e   :  { %v1275_v0 = vpack.c.bf16 %v909_v22, %v908_v21 }
 0x56f   :  { %1232 = vmatpush1.bf16.msra.mxu1 %v1231_v25  ;;  %v1278_v25 = vpack.c.bf16 %v911_v24, %v910_v23 }
 0x570   :  { %1234 = vmatprep.subr.bf16.mxu1 %v1233_v26  ;;  %v912_v26 = vld [vmem:[%s1961_s10 + $0x90] sm:$0xff] }
 0x571   :  { %v1281_v28 = vpack.c.bf16 %v913_v27, %v912_v26 }
 0x573   :  { %1236 = vmatpush1.bf16.msra.mxu1 %v1235_v31 }
 0x574   :  { %1238 = vmatprep.subr.bf16.mxu1 %v1237_v32 }
 0x577   :  { %1240 = vmatpush1.bf16.msra.mxu1 %v1239_v37  ;;  %v916_v37 = vld [vmem:[%s1961_s10 + $0xb0] sm:$0xff] }
 0x578   :  { %1242 = vmatprep.subr.bf16.mxu1 %v1241_v38  ;;  %v917_v38 = vld [vmem:[%s1961_s10 + $0xb8] sm:$0xff] }
 0x579   :  { %v1287_v39 = vpack.c.bf16 %v917_v38, %v916_v37 }
 0x57b   :  { %1244 = vmatpush1.bf16.msra.mxu1 %v1243_v43 }
 0x57c   :  { %1246 = vmatprep.subr.bf16.mxu1 %v1245_v44 }
 0x57f   :  { %1248 = vmatpush1.bf16.msra.mxu1 %v1247_v47 }
 0x580   :  { %1250 = vmatprep.subr.bf16.mxu1 %v1249_v55 }
 0x583   :  { %1252 = vmatpush1.bf16.msra.mxu1 %v1251_v58 }
 0x63e   :  { %v695_v49 = vpop.f32.mrb[8].mxu1 }
 0x63f   :  { %v696_v50 = vadd.f32 %v695_v49, %v625_v48  ;;  %v1123_v51 = vpop.f32.mrb[9].mxu1  ;;  %v918_v48 = vld [vmem:[%s1962_s11 + $0x11] ss:$0 sm:$0xff] }
 0x641   :  { %v699_v52 = vmax.f32 %v696_v50, 0.0 }
 0x643   :  { %1137 = vmatmul.mubr.msk.f32.vlgmr.msra.gmra.mrb[4].mxu0 %vm120_vm0, %v699_v52 }
 0x644   :  { %1255 = vmatpush1.bf16.msra.mxu0 %v1254_v62 }
 0x645   :  { %1256 = vmatprep.subr.bf16.mxu0 %v1428_v1 }
 0x648   :  { %1258 = vmatpush1.bf16.msra.mxu0 %v1257_v2 }
 0x649   :  { %1259 = vmatprep.subr.bf16.mxu0 %v1428_v1 }
 0x64c   :  { %1261 = vmatpush1.bf16.msra.mxu0 %v1260_v5 }
 0x64d   :  { %1262 = vmatprep.subr.bf16.mxu0 %v1428_v1 }
 0x650   :  { %1264 = vmatpush1.bf16.msra.mxu0 %v1263_v8 }
 0x651   :  { %1265 = vmatprep.subr.bf16.mxu0 %v1428_v1 }
 0x654   :  { %1267 = vmatpush1.bf16.msra.mxu0 %v1266_v13 }
 0x655   :  { %1268 = vmatprep.subr.bf16.mxu0 %v1428_v1 }
 0x658   :  { %1270 = vmatpush1.bf16.msra.mxu0 %v1269_v17 }
 0x659   :  { %1271 = vmatprep.subr.bf16.mxu0 %v1428_v1 }
 0x65c   :  { %1273 = vmatpush1.bf16.msra.mxu0 %v1272_v20 }
 0x65d   :  { %1274 = vmatprep.subr.bf16.mxu0 %v1428_v1 }
 0x660   :  { %1276 = vmatpush1.bf16.msra.mxu0 %v1275_v0 }
 0x661   :  { %1277 = vmatprep.subr.bf16.mxu0 %v1428_v1 }
 0x664   :  { %1279 = vmatpush1.bf16.msra.mxu0 %v1278_v25 }
 0x665   :  { %1280 = vmatprep.subr.bf16.mxu0 %v1428_v1 }
 0x668   :  { %1282 = vmatpush1.bf16.msra.mxu0 %v1281_v28 }
 0x669   :  { %1283 = vmatprep.subr.bf16.mxu0 %v1428_v1 }
 0x66c   :  { %1285 = vmatpush1.bf16.msra.mxu0 %v1284_v36 }
 0x66d   :  { %1286 = vmatprep.subr.bf16.mxu0 %v1428_v1  ;;  %v815_v1 = vrot.slane %v1019_v40, %v116_v14 }
 0x670   :  { %1288 = vmatpush1.bf16.msra.mxu0 %v1287_v39 }
 0x716   :  { %v776_v30 = vpop.f32.mrb[4].mxu0 }
 0x717   :  { %v777_v31 = vadd.f32 %v776_v30, %v706_v29  ;;  %v1138_v32 = vpop.f32.mrb[5].mxu0 }
 0x719   :  { %v780_v33 = vmax.f32 %v777_v31, 0.0 }
 0x71b   :  { %1020 = vmatmul.mubr.msk.f32.vlgmr.msra.gmra.mrb[10].mxu1 %vm310_vm3, %v780_v33 }
 0x7ee   :  { %v887_v42 = vpop.f32.mrb[10].mxu1 }
 0x7ef   :  { %v888_v43 = vadd.f32 %v887_v42, %v811_v41  ;;  %v889_v44 = vpop.f32.mrb[11].mxu1 }
 0x7f0   :  { %v890_v45 = vadd.f32 %v889_v44, %v815_v1 }
 0x7f1   :  { %v892_v47 = vmax.f32 %v888_v43, 0.0 }
 0x7f2   :  { %v893_v46 = vmax.f32 %v890_v45, 0.0 }
 0x7f4   :  { %1021 = vmatprep.mubr.msk.f32.mxu0 %vm222_vm1, %v893_v46 }
 0x7f5   :  { %987 = vmatmul.mubr.f32.vlgmr.msra.gmra.mrb[6].mxu0 %v892_v47 }
 0x8c8   :  { %v988_v49 = vpop.f32.mrb[6].mxu0 }
 0x8c9   :  { %v989_v12 = vadd.f32 %v988_v49, %v918_v48  ;;  %v990_v11 = vpop.f32.mrb[7].mxu0 }
 0x8cb   :  { %993 = vst.msk [vmem:[#allocation10] sm:$0x3] %vm992_vm6, %v989_v12 }
 0x8cc   :  { %1400 = shalt.err (!%p1397_p8)
}
 0x8cd   :  { %s1401_s20 = scalar_lea.hbm %s1963_s12, 32 }
 0x8ce   :  { %p1402_p9 = scmp.ne.s32.totalorder %s1963_s12, %s1401_s20  ;;  %p1405_p10 = scmp.lt.u32.totalorder %s1401_s20, %s1963_s12 }
 0x8d0   :  { %p1407_p11 = pnand %p1405_p10, %p1402_p9 }
 0x8d2   :  { %1410 = shalt.err (!%p1407_p11)
}
 0x8d3   :  { %1003 = dma.vmem_to_hbm [thread:$0]  %s1001_s17, 32, %s1963_s12, [#allocation4]  }
 0x8d4   :  { %1417 = dma.done.wait [#allocation4], 32  }
 0x8d5   :  { %1418 = vsyncadd [#allocation4], 4294967264 }
 0x8d6   :  { %1007 = vsyncpa [#allocation3], 1 }
 0x8d7   :  { %1008 = vsyncpa [#allocation6], 1 }
 0x8d8   :  { %1009 = vsyncpa [#allocation9], 1 }
 0x8d9   :  { %1010 = vsyncpa [#allocation4], 1 }

</bundles_post_ra>
